<compile_context>
chip_gen: v6e
topology: v6e:2x2x1
jax: 0.10.0
libtpu: 0.0.40
codegen_flags: <defaults>
</compile_context>

<pallas_src>
import functools

import jax
import jax.numpy as jnp
from jax.experimental import pallas as pl
from jax.experimental.pallas import tpu as pltpu


def _round_up(x: int, m: int) -> int:
    return ((x + m - 1) // m) * m


def _pad2(a, rows: int, cols: int):
    pr, pc = rows - a.shape[0], cols - a.shape[1]
    if pr or pc:
        a = jnp.pad(a, ((0, pr), (0, pc)))
    return a


def _tpu_generation() -> str:
    try:
        kind = jax.devices()[0].device_kind.lower()
    except Exception:
        return "unknown"
    if "v5 lite" in kind or "v5e" in kind or "v5litepod" in kind:
        return "v5e"
    if "v6" in kind:
        return "v6e"
    if "v7" in kind:
        return "v7x"
    return "unknown"


# Per-generation tiling / VMEM policy.
#   v5e/v6e: 128 MiB physical VMEM -> big tiles, raise vmem_limit to 96 MiB.
#            v5e additionally gets a 3-deep weight buffer (low HBM BW) and a
#            128-aligned tp for the 4x128^2 MXU feed.
#   v7x:     64 MiB physical VMEM per TC -> ~32 MiB tile budget (40 MiB limit)
#            and force >=2 parallel blocks so both TensorCores get work.
_GEN_CONFIG = {
    "v5e":     dict(tb_max=512, tk_max=2048, tp_max=512,  vmem_limit=96 << 20,
                    budget=80 << 20, w_buffers=3, split_parallel=False),
    "v6e":     dict(tb_max=512, tk_max=2048, tp_max=1024, vmem_limit=96 << 20,
                    budget=80 << 20, w_buffers=2, split_parallel=False),
    "v7x":     dict(tb_max=512, tk_max=1024, tp_max=512,  vmem_limit=40 << 20,
                    budget=32 << 20, w_buffers=2, split_parallel=True),
    "unknown": dict(tb_max=512, tk_max=1024, tp_max=512,  vmem_limit=40 << 20,
                    budget=32 << 20, w_buffers=2, split_parallel=False),
}


def _vmem_estimate(tb, tk, tp, x_bytes, w_bytes, w_buffers):
    return (2 * tb * tk * x_bytes            # past_target tiles (double buffered)
            + w_buffers * tk * tp * w_bytes  # weight tiles
            + 2 * tp * 4                     # bias tiles
            + 2 * tb * tp * 4                # output tiles (accumulated in place)
            + tb * 128 * 4)                  # ssum scratch (lane padded)


def _forecast_kernel(pt_ref, w_ref, b_ref, o_ref, ssum_ref, *, inv_seq_len):
    k = pl.program_id(2)

    @pl.when(k == 0)
    def _init():
        ssum_ref[...] = jnp.zeros_like(ssum_ref)
        o_ref[...] = jnp.zeros_like(o_ref)

    pt = pt_ref[...]                                     # [tb, tk] (bf16 or f32)

    # Per-row running sum for the mean scale (all-ones observed mask -> the
    # denominator is the compile-time constant seq_len -> inv_seq_len).
    # Recomputed for every (i, j) output tile (NOT gated on j == 0) so it stays
    # correct when the parallel j axis is sharded across TensorCores; it is
    # cheap XLU/VPU filler hidden under the weight DMA.
    ssum_ref[...] += jnp.sum(pt.astype(jnp.float32), axis=-1, keepdims=True)

    # (pt / scale) @ W * scale == pt @ W : scale-free MXU accumulation straight
    # into the f32, k-resident output block (no separate acc scratch).
    o_ref[...] += jnp.dot(pt, w_ref[...], preferred_element_type=jnp.float32)

    @pl.when(k == pl.num_programs(2) - 1)
    def _finalize():
        scale = ssum_ref[...] * inv_seq_len              # [tb, 1] mean(past_target)
        scale = jnp.where(jnp.abs(scale) < 1e-8, jnp.ones_like(scale), scale)
        o_ref[...] += b_ref[...] * scale


def make_wrapped_forecast_model(weight, bias, *, param_dtype=jnp.bfloat16,
                                generation=None, tile_overrides=None):
    """Pad + cast the parameters ONCE and return a forward(x) callable.

    weight: [S, P]; bias: [1, P] or [P].  forward(x: [B, S, 1]) -> [B, P] f32.
    """
    seq_len, pred_len = weight.shape
    bias = jnp.asarray(bias).reshape(1, -1)
    assert bias.shape[1] == pred_len

    gen = generation or _tpu_generation()
    cfg = dict(_GEN_CONFIG.get(gen, _GEN_CONFIG["unknown"]))
    if tile_overrides:
        cfg.update(tile_overrides)

    tk = min(_round_up(seq_len, 128), cfg["tk_max"])
    tp = min(_round_up(pred_len, 128), cfg["tp_max"])

    # v7x megacore: make sure the parallel axes have >= 2 blocks so both
    # TensorCores (each with its own HBM path) get work even for tiny batches.
    if cfg["split_parallel"] and _round_up(pred_len, tp) // tp == 1 and tp >= 256:
        tp //= 2

    s_pad = _round_up(seq_len, tk)
    p_pad = _round_up(pred_len, tp)

    # Parameter-load-time padding + cast: the weight stream dominates HBM
    # traffic for small-batch forecasting; padding/casting per forward would
    # double that traffic.
    w_p = _pad2(weight, s_pad, p_pad).astype(param_dtype)
    b_p = _pad2(bias, 1, p_pad).astype(jnp.float32)

    elem_bytes = jnp.dtype(param_dtype).itemsize
    kernel = functools.partial(_forecast_kernel, inv_seq_len=1.0 / float(seq_len))

    def forward(x):
        batch_size, x_seq_len, feat_dim = x.shape
        assert feat_dim == 1, "wrapper squeezes the trailing feature dim"
        assert x_seq_len == seq_len

        # Metadata-only squeeze [B, S, 1] -> [B, S] (no HBM round trip).
        past_target = x.reshape(batch_size, seq_len)

        # tb covers the whole (rounded-up) batch when it fits -> the weight is
        # streamed from HBM exactly once.
        tb = min(_round_up(batch_size, 8), cfg["tb_max"])
        tk_c, tp_c = tk, tp
        # Shrink tiles (halving preserves divisibility of the pre-padded W/bias)
        # until the double-buffered working set fits this generation's budget.
        while _vmem_estimate(tb, tk_c, tp_c, elem_bytes, elem_bytes,
                             cfg["w_buffers"]) > cfg["budget"]:
            if tk_c > 128:
                tk_c //= 2
            elif tp_c > 128:
                tp_c //= 2
            elif tb > 8:
                tb //= 2
            else:
                break

        b_pad = _round_up(batch_size, tb)
        pt_p = _pad2(past_target, b_pad, s_pad).astype(param_dtype)

        grid = (b_pad // tb, p_pad // tp_c, s_pad // tk_c)

        w_spec_kwargs = {}
        if cfg["w_buffers"] != 2:
            # v5e: 3-deep weight pipeline hides DMA ramp on the ~0.82 TB/s HBM.
            w_spec_kwargs["pipeline_mode"] = pl.Buffered(cfg["w_buffers"])

        out = pl.pallas_call(
            kernel,
            out_shape=jax.ShapeDtypeStruct((b_pad, p_pad), jnp.float32),
            grid_spec=pltpu.PrefetchScalarGridSpec(
                num_scalar_prefetch=0,
                grid=grid,
                in_specs=[
                    pl.BlockSpec((tb, tk_c), lambda i, j, k: (i, k)),     # past_target
                    pl.BlockSpec((tk_c, tp_c), lambda i, j, k: (k, j),    # weight
                                 **w_spec_kwargs),
                    pl.BlockSpec((1, tp_c), lambda i, j, k: (0, j)),      # bias
                ],
                out_specs=pl.BlockSpec((tb, tp_c), lambda i, j, k: (i, j)),
                scratch_shapes=[
                    pltpu.VMEM((tb, 1), jnp.float32),   # per-row sum -> scale
                ],
            ),
            compiler_params=pltpu.CompilerParams(
                # Reduction axis (S) innermost/"arbitrary"; B/P parallel so the
                # v7x TensorCores shard them.
                dimension_semantics=("parallel", "parallel", "arbitrary"),
                vmem_limit_bytes=cfg["vmem_limit"],
            ),
        )(pt_p, w_p, b_p)

        return out[:batch_size, :pred_len]

    return forward


def _reference(x, weight, bias):
    pt = jnp.squeeze(x, -1)
    obs = jnp.ones_like(pt)
    scale = jnp.sum(pt * obs, -1, keepdims=True) / jnp.sum(obs, -1, keepdims=True)
    scale = jnp.where(jnp.abs(scale) < 1e-8, 1.0, scale)
    return ((pt / scale) @ weight + jnp.asarray(bias).reshape(1, -1)) * scale


if __name__ == "__main__":
    key = jax.random.PRNGKey(0)
    kx, kw, kb, kx2, kw2, kb2 = jax.random.split(key, 6)

    # --- toy shapes consistent with the module (B, S, feat=1) -> (B, P) ---
    B, S, P = 2, 8, 8
    x = jax.random.normal(kx, (B, S, 1), dtype=jnp.float32)
    weight = jax.random.normal(kw, (S, P), dtype=jnp.float32) * 0.1
    bias = jax.random.normal(kb, (1, P), dtype=jnp.float32) * 0.01
    ref = _reference(x, weight, bias)

    # Exact-parity f32 parameter path.
    fwd_f32 = make_wrapped_forecast_model(weight, bias, param_dtype=jnp.float32)
    y = fwd_f32(x)
    jax.block_until_ready(y)
    assert jnp.allclose(y, ref, atol=1e-5, rtol=1e-5), "f32 mismatch vs reference"

    # Default bf16-input MXU path (f32 accumulation); params padded/cast once.
    # Note: scale is computed from bf16-quantized past_target, so tiny drift vs
    # the explicitly normalize/denormalize reference is expected.
    fwd_bf16 = make_wrapped_forecast_model(weight, bias)
    y_bf16 = fwd_bf16(x)
    jax.block_until_ready(y_bf16)
    assert jnp.allclose(y_bf16, ref, atol=5e-2, rtol=5e-2), "bf16 mismatch vs reference"

    # --- larger case exercising a real (2, 2, 2) grid with k-accumulation ---
    B2, S2, P2 = 16, 256, 256
    x2 = jax.random.normal(kx2, (B2, S2, 1), dtype=jnp.float32)
    w2 = jax.random.normal(kw2, (S2, P2), dtype=jnp.float32) * 0.05
    b2 = jax.random.normal(kb2, (1, P2), dtype=jnp.float32) * 0.01
    ref2 = _reference(x2, w2, b2)
    fwd2 = make_wrapped_forecast_model(
        w2, b2, param_dtype=jnp.float32,
        tile_overrides=dict(tb_max=8, tk_max=128, tp_max=128, split_parallel=False))
    y2 = fwd2(x2)
    jax.block_until_ready(y2)
    assert jnp.allclose(y2, ref2, atol=1e-4, rtol=1e-4), "tiled-grid mismatch vs reference"

    print("KERNEL_OK")
</pallas_src>

<mosaic_0001>
module attributes {stable_mosaic.version = 11 : i64} {
  func.func @_forecast_kernel(%arg0: i32, %arg1: i32, %arg2: i32, %arg3: memref<8x128xf32, #tpu.memory_space<vmem>>, %arg4: memref<128x128xf32, #tpu.memory_space<vmem>>, %arg5: memref<1x128xf32, #tpu.memory_space<vmem>>, %arg6: memref<8x128xf32, #tpu.memory_space<vmem>>, %arg7: memref<8x1xf32, #tpu.memory_space<vmem>>) attributes {dimension_semantics = [#tpu.dimension_semantics<parallel>, #tpu.dimension_semantics<parallel>, #tpu.dimension_semantics<arbitrary>], iteration_bounds = array<i64: 1, 1, 1>, scalar_prefetch = 0 : i64, scratch_operands = 1 : i64, tpu.core_type = #tpu.core_type<tc>, window_params = [{transform_indices = @transform_0, window_bounds = array<i64: 8, 128>}, {transform_indices = @transform_1, window_bounds = array<i64: 128, 128>}, {transform_indices = @transform_2, window_bounds = array<i64: 1, 128>}, {transform_indices = @transform_3, window_bounds = array<i64: 8, 128>}]} {
    %c0_i32 = arith.constant 0 : i32
    %0 = arith.cmpi eq, %arg2, %c0_i32 : i32
    %1 = arith.extui %0 : i1 to i32
    %c0_i32_0 = arith.constant 0 : i32
    %2 = arith.cmpi ne, %1, %c0_i32_0 : i32
    scf.if %2 {
      %cst_15 = arith.constant 0.000000e+00 : f32
      %17 = vector.broadcast %cst_15 : f32 to vector<8x1xf32>
      %c0_16 = arith.constant 0 : index
      %c0_17 = arith.constant 0 : index
      %18 = vector.load %arg7[%c0_16, %c0_17] : memref<8x1xf32, #tpu.memory_space<vmem>>, vector<8x1xf32>
      tpu.vector_store %arg7[%c0_16, %c0_17], %17 {strides = array<i32>} : memref<8x1xf32, #tpu.memory_space<vmem>>, vector<8x1xf32>,
      %cst_18 = arith.constant 0.000000e+00 : f32
      %19 = vector.broadcast %cst_18 : f32 to vector<8x128xf32>
      %c0_19 = arith.constant 0 : index
      %c0_20 = arith.constant 0 : index
      %20 = vector.load %arg6[%c0_19, %c0_20] : memref<8x128xf32, #tpu.memory_space<vmem>>, vector<8x128xf32>
      tpu.vector_store %arg6[%c0_19, %c0_20], %19 {strides = array<i32>} : memref<8x128xf32, #tpu.memory_space<vmem>>, vector<8x128xf32>,
    } else {
    }
    %c0 = arith.constant 0 : index
    %c0_1 = arith.constant 0 : index
    %3 = vector.load %arg3[%c0, %c0_1] : memref<8x128xf32, #tpu.memory_space<vmem>>, vector<8x128xf32>
    %c0_2 = arith.constant 0 : index
    %c0_3 = arith.constant 0 : index
    %4 = vector.load %arg7[%c0_2, %c0_3] : memref<8x1xf32, #tpu.memory_space<vmem>>, vector<8x1xf32>
    %cst = arith.constant dense<0.000000e+00> : vector<8xf32>
    %5 = vector.multi_reduction <add>, %3, %cst [1] : vector<8x128xf32> to vector<8xf32>
    %6 = vector.shape_cast %5 : vector<8xf32> to vector<8x1xf32>
    %7 = arith.addf %4, %6 : vector<8x1xf32>
    %c0_4 = arith.constant 0 : index
    %c0_5 = arith.constant 0 : index
    %8 = vector.load %arg7[%c0_4, %c0_5] : memref<8x1xf32, #tpu.memory_space<vmem>>, vector<8x1xf32>
    tpu.vector_store %arg7[%c0_4, %c0_5], %7 {strides = array<i32>} : memref<8x1xf32, #tpu.memory_space<vmem>>, vector<8x1xf32>,
    %c0_6 = arith.constant 0 : index
    %c0_7 = arith.constant 0 : index
    %9 = vector.load %arg6[%c0_6, %c0_7] : memref<8x128xf32, #tpu.memory_space<vmem>>, vector<8x128xf32>
    %c0_8 = arith.constant 0 : index
    %c0_9 = arith.constant 0 : index
    %10 = vector.load %arg4[%c0_8, %c0_9] : memref<128x128xf32, #tpu.memory_space<vmem>>, vector<128x128xf32>
    %cst_10 = arith.constant dense<0.000000e+00> : vector<8x128xf32>
    %11 = tpu.matmul %3, %10, %cst_10 {dimension_numbers = #tpu.dot_dimension_numbers<[1], [0], [0], [1], [0, 0, 1, 1], [], []>} : vector<8x128xf32>, vector<128x128xf32>, vector<8x128xf32> -> vector<8x128xf32>
    %12 = arith.addf %9, %11 : vector<8x128xf32>
    %c0_11 = arith.constant 0 : index
    %c0_12 = arith.constant 0 : index
    %13 = vector.load %arg6[%c0_11, %c0_12] : memref<8x128xf32, #tpu.memory_space<vmem>>, vector<8x128xf32>
    tpu.vector_store %arg6[%c0_11, %c0_12], %12 {strides = array<i32>} : memref<8x128xf32, #tpu.memory_space<vmem>>, vector<8x128xf32>,
    %c0_i32_13 = arith.constant 0 : i32
    %14 = arith.cmpi eq, %arg2, %c0_i32_13 : i32
    %15 = arith.extui %14 : i1 to i32
    %c0_i32_14 = arith.constant 0 : i32
    %16 = arith.cmpi ne, %15, %c0_i32_14 : i32
    scf.if %16 {
      %c0_15 = arith.constant 0 : index
      %c0_16 = arith.constant 0 : index
      %17 = vector.load %arg7[%c0_15, %c0_16] : memref<8x1xf32, #tpu.memory_space<vmem>>, vector<8x1xf32>
      %cst_17 = arith.constant 1.250000e-01 : f32
      %18 = vector.broadcast %cst_17 : f32 to vector<8x1xf32>
      %19 = arith.mulf %17, %18 : vector<8x1xf32>
      %20 = math.absf %19 : vector<8x1xf32>
      %cst_18 = arith.constant 9.99999993E-9 : f32
      %21 = vector.broadcast %cst_18 : f32 to vector<8x1xf32>
      %22 = arith.cmpf olt, %20, %21 : vector<8x1xf32>
      %cst_19 = arith.constant 1.000000e+00 : f32
      %23 = vector.broadcast %cst_19 : f32 to vector<8x1xf32>
      %24 = arith.select %22, %23, %19 : vector<8x1xi1>, vector<8x1xf32>
      %c0_20 = arith.constant 0 : index
      %c0_21 = arith.constant 0 : index
      %25 = vector.load %arg6[%c0_20, %c0_21] : memref<8x128xf32, #tpu.memory_space<vmem>>, vector<8x128xf32>
      %c0_22 = arith.constant 0 : index
      %c0_23 = arith.constant 0 : index
      %26 = vector.load %arg5[%c0_22, %c0_23] : memref<1x128xf32, #tpu.memory_space<vmem>>, vector<1x128xf32>
      %27 = vector.broadcast %26 : vector<1x128xf32> to vector<8x128xf32>
      %28 = vector.broadcast %24 : vector<8x1xf32> to vector<8x128xf32>
      %29 = arith.mulf %27, %28 : vector<8x128xf32>
      %30 = arith.addf %25, %29 : vector<8x128xf32>
      %c0_24 = arith.constant 0 : index
      %c0_25 = arith.constant 0 : index
      %31 = vector.load %arg6[%c0_24, %c0_25] : memref<8x128xf32, #tpu.memory_space<vmem>>, vector<8x128xf32>
      tpu.vector_store %arg6[%c0_24, %c0_25], %30 {strides = array<i32>} : memref<8x128xf32, #tpu.memory_space<vmem>>, vector<8x128xf32>,
    } else {
    }
    return
  }
  func.func @transform_0(%arg0: i32, %arg1: i32, %arg2: i32) -> (i32, i32) {
    %c0_i32 = arith.constant 0 : i32
    return %arg0, %arg2 : i32, i32
  }
  func.func @transform_1(%arg0: i32, %arg1: i32, %arg2: i32) -> (i32, i32) {
    %c0_i32 = arith.constant 0 : i32
    return %arg2, %arg1 : i32, i32
  }
  func.func @transform_2(%arg0: i32, %arg1: i32, %arg2: i32) -> (i32, i32) {
    %c0_i32 = arith.constant 0 : i32
    %c0_i32_0 = arith.constant 0 : i32
    return %c0_i32, %arg1 : i32, i32
  }
  func.func @transform_3(%arg0: i32, %arg1: i32, %arg2: i32) -> (i32, i32) {
    %c0_i32 = arith.constant 0 : i32
    return %arg0, %arg1 : i32, i32
  }
}

</mosaic_0001>

<bundles_post_ra>
// kernel: tpu_custom_call.1
= control target key start
LH: loop header
LB: loop body
LE: loop exit
PB: predicated region body
PF: predicated region fallthrough
CT: control target
= control target key end

     0   :  { %8 = vsyncpa [#allocation4], 0  ;;  %s354_s0 = inlined_call_operand.hbm [shape: f32[8,128], index: 0, kind: input, shape index: {}]   ;;  %s355_s1 = inlined_call_operand.hbm [shape: f32[128,128], index: 1, kind: input, shape index: {}]   ;;  %s356_s2 = inlined_call_operand.vmem [shape: f32[1,128], index: 2, kind: input, shape index: {}]   ;;  %s357_s3 = inlined_call_operand.hbm [shape: f32[8,128], index: 3, kind: output, shape index: {}]  }
   0x1   :  { %9 = vsyncpa [#allocation7], 0 }
   0x2   :  { %10 = vsyncpa [#allocation5], 0  ;;  %s312_s12 = smov [#allocation3]   ;;  %s313_s14 = smov [#allocation6]  }
   0x3   :  { %s17_s13 = sshll.u32 %s312_s12, 4  ;;  %s26_s15 = sshll.u32 %s313_s14, 4  ;;  %s18_s13 = int_to_ptr.vmem [resolvable:$true] %s17_s13  ;;  %s27_s15 = int_to_ptr.vmem [resolvable:$true] %s26_s15 }
   0x4   :  { %s254_s16 = scalar_lea.vmem %s18_s13, 128  ;;  %p259_p1 = scmp.lt.s32.totalorder %s18_s13, %s18_s13 }
   0x5   :  { %p255_p0 = scmp.ne.s32.totalorder %s18_s13, %s254_s16  ;;  %p260_p2 = scmp.lt.s32.totalorder %s254_s16, %s254_s16 }
   0x7   :  { %p261_p3 = por %p260_p2, %p259_p1 }
   0x9   :  { %p262_p4 = pnand %p261_p3, %p255_p0 }
   0xb   :  { %265 = shalt.err (!%p262_p4)
}
   0xc   :  { %20 = dma.hbm_to_vmem [thread:$0]  %s354_s0, 128, %s18_s13, [#allocation4]  }
   0xd   :  { %s274_s19 = scalar_lea.vmem %s27_s15, 2048  ;;  %p279_p6 = scmp.lt.s32.totalorder %s27_s15, %s27_s15 }
   0xe   :  { %p275_p5 = scmp.ne.s32.totalorder %s27_s15, %s274_s19  ;;  %p280_p7 = scmp.lt.s32.totalorder %s274_s19, %s274_s19 }
  0x10   :  { %p281_p8 = por %p280_p7, %p279_p6 }
  0x12   :  { %p282_p9 = pnand %p281_p8, %p275_p5 }
  0x14   :  { %285 = shalt.err (!%p282_p9)
}
  0x15   :  { %s314_s20 = smov 128   ;;  %s315_s21 = smov 8  }
  0x16   :  { %32 = dma.hbm_to_vmem [thread:$0]  %s355_s1, 2048, %s27_s15, [#allocation7], %s314_s20, %s314_s20, %s315_s21  }
  0x17   :  { %306 = dma.done.wait [#allocation4], 128  }
  0x18   :  { %307 = vsyncadd [#allocation4], 4294967168 }
  0x19   :  { %308 = dma.done.wait [#allocation7], 2048  }
  0x1a   :  { %309 = vsyncadd [#allocation7], 4294965248  ;;  %vm45_vm0 = vcmask 7168   ;;  %v316_v0 = vmov 0.0   ;;  %vm317_vm1 = vmmov 0   ;;  %v48_v1 = vld [vmem:[#allocation3] sm:$0xff] }
  0x1b   :  { %202 = vmatprep.subr.mxu0 %v316_v0  ;;  %234 = vmatprep.mubr.msk.f32.mxu0 %vm317_vm1, %v316_v0  ;;  %46 = vst.msk [vmem:[#allocation2] sm:$0xff] %vm45_vm0, %v316_v0  ;;  %v71_v2 = vld [vmem:[#allocation6 + $0x78] sm:$0xff]  ;;  %v70_v3 = vld [vmem:[#allocation6 + $0x70] sm:$0xff]  ;;  %v69_v4 = vld [vmem:[#allocation6 + $0x68] sm:$0xff]  ;;  %v318_v11 = vmov 0   ;;  %s319_s24 = smov [#allocation8]  }
  0x1c   :  { %50 = vadd.xlane.f32.xlu0 %v48_v1  ;;  %203 = vmatpush3.msra.mxu0 %v71_v2  ;;  %v68_v5 = vld [vmem:[#allocation6 + $0x60] sm:$0xff]  ;;  %v67_v6 = vld [vmem:[#allocation6 + $0x58] sm:$0xff]  ;;  %v66_v7 = vld [vmem:[#allocation6 + $0x50] sm:$0xff]  ;;  %s174_s25 = sshll.u32 %s319_s24, 4  ;;  %s175_s25 = int_to_ptr.vmem [resolvable:$true] %s174_s25 }
  0x1d   :  { %204 = vmatprep.subr.mxu0 %v316_v0  ;;  %v65_v8 = vld [vmem:[#allocation6 + $0x48] sm:$0xff]  ;;  %v64_v9 = vld [vmem:[#allocation6 + $0x40] sm:$0xff]  ;;  %v63_v10 = vld [vmem:[#allocation6 + $0x38] sm:$0xff]  ;;  %245 = vset.pattern.permute.xlu0 %v318_v11  ;;  %s286_s26 = scalar_lea.vmem %s175_s25, 128  ;;  %p291_p11 = scmp.lt.s32.totalorder %s175_s25, %s175_s25 }
  0x1e   :  { %205 = vmatpush3.msra.mxu0 %v70_v3  ;;  %v62_v12 = vld [vmem:[#allocation6 + $0x30] sm:$0xff]  ;;  %v61_v13 = vld [vmem:[#allocation6 + $0x28] sm:$0xff]  ;;  %v60_v14 = vld [vmem:[#allocation6 + $0x20] sm:$0xff]  ;;  %p287_p10 = scmp.ne.s32.totalorder %s175_s25, %s286_s26  ;;  %p292_p12 = scmp.lt.s32.totalorder %s286_s26, %s286_s26 }
  0x1f   :  { %206 = vmatprep.subr.mxu0 %v316_v0  ;;  %v59_v15 = vld [vmem:[#allocation6 + $0x18] sm:$0xff]  ;;  %v58_v16 = vld [vmem:[#allocation6 + $0x10] sm:$0xff]  ;;  %v57_v17 = vld [vmem:[#allocation6 + $0x8] sm:$0xff] }
  0x20   :  { %207 = vmatpush3.msra.mxu0 %v69_v4  ;;  %v56_v18 = vld [vmem:[#allocation6] sm:$0xff]  ;;  %v184_v28 = vld [vmem:[%s356_s2] ss:$0 sm:$0xff]  ;;  %p293_p13 = por %p292_p12, %p291_p11 }
  0x21   :  { %208 = vmatprep.subr.mxu0 %v316_v0 }
  0x22   :  { %209 = vmatpush3.msra.mxu0 %v68_v5  ;;  %v49_v19 = vld [vmem:[#allocation2] sm:$0xff]  ;;  %p294_p0 = pnand %p293_p13, %p287_p10 }
  0x23   :  { %210 = vmatprep.subr.mxu0 %v316_v0 }
  0x24   :  { %211 = vmatpush3.msra.mxu0 %v67_v6 }
  0x25   :  { %212 = vmatprep.subr.mxu0 %v316_v0 }
  0x26   :  { %213 = vmatpush3.msra.mxu0 %v66_v7 }
  0x27   :  { %214 = vmatprep.subr.mxu0 %v316_v0 }
  0x28   :  { %215 = vmatpush3.msra.mxu0 %v65_v8 }
  0x29   :  { %216 = vmatprep.subr.mxu0 %v316_v0 }
  0x2a   :  { %217 = vmatpush3.msra.mxu0 %v64_v9 }
  0x2b   :  { %218 = vmatprep.subr.mxu0 %v316_v0 }
  0x2c   :  { %219 = vmatpush3.msra.mxu0 %v63_v10 }
  0x2d   :  { %220 = vmatprep.subr.mxu0 %v316_v0 }
  0x2e   :  { %221 = vmatpush3.msra.mxu0 %v62_v12 }
  0x2f   :  { %222 = vmatprep.subr.mxu0 %v316_v0 }
  0x30   :  { %223 = vmatpush3.msra.mxu0 %v61_v13 }
  0x31   :  { %224 = vmatprep.subr.mxu0 %v316_v0 }
  0x32   :  { %225 = vmatpush3.msra.mxu0 %v60_v14 }
  0x33   :  { %226 = vmatprep.subr.mxu0 %v316_v0 }
  0x34   :  { %227 = vmatpush3.msra.mxu0 %v59_v15 }
  0x35   :  { %228 = vmatprep.subr.mxu0 %v316_v0 }
  0x36   :  { %229 = vmatpush3.msra.mxu0 %v58_v16 }
  0x37   :  { %230 = vmatprep.subr.mxu0 %v316_v0 }
  0x38   :  { %231 = vmatpush3.msra.mxu0 %v57_v17 }
  0x39   :  { %232 = vmatprep.subr.mxu0 %v316_v0 }
  0x3a   :  { %233 = vmatpush3.msra.mxu0 %v56_v18 }
  0x3b   :  { %235 = vmatmul.mubr.f32.vlgmr.msra.gmra.mxu0 %v48_v1 }
  0xa5   :  { %v51_v20 = vpop.xlane.xlu0 %50 }
  0xa6   :  { %v52_v21 = vadd.f32 %v51_v20, %v49_v19 }
  0xa8   :  { %54 = vst.msk [vmem:[#allocation2] sm:$0xff] %vm45_vm0, %v52_v21 }
  0xaf   :  { %v147_v22 = vld [vmem:[#allocation2] sm:$0xff] }
  0xb0   :  { %v148_v23 = vmul.f32 0.125, %v147_v22 }
  0xb2   :  { %v149_v24 = vand.u32 2147483647, %v148_v23 }
  0xb4   :  { %vm150_vm2 = vcmp.lt.f32.partialorder %v149_v24, 1e-08 }
  0xb5   :  { %v151_v25 = vsel %vm150_vm2, 1.0, %v148_v23 }
  0xb6   :  { %162 = vperm.xlu0 %245, %v151_v25  }
  0xfb   :  { %v138_v26 = vpop.f32.mrf.mxu0 }
  0xfd   :  { %v236_v27 = vpop.f32.mrf.mxu0 }
 0x131   :  { %v163_v29 = vpop.permute.xlu0 %162 }
 0x132   :  { %v165_v30 = vmul.f32 %v184_v28, %v163_v29 }
 0x134   :  { %v166_v31 = vadd.f32 %v165_v30, %v138_v26 }
 0x136   :  { %167 = vst [vmem:[#allocation8] sm:$0xff] %v166_v31 }
 0x137   :  { %297 = shalt.err (!%p294_p0)
}
 0x138   :  { %177 = dma.vmem_to_hbm [thread:$0]  %s175_s25, 128, %s357_s3, [#allocation5]  }
 0x139   :  { %310 = dma.done.wait [#allocation5], 128  }
 0x13a   :  { %311 = vsyncadd [#allocation5], 4294967168 }
 0x13b   :  { %181 = vsyncpa [#allocation4], 1 }
 0x13c   :  { %182 = vsyncpa [#allocation7], 1 }
 0x13d   :  { %183 = vsyncpa [#allocation5], 1 }

</bundles_post_ra>
